<compile_context>
chip_gen: v6e
topology: v6e:2x2x1
jax: 0.10.0
libtpu: 0.0.40
codegen_flags: <defaults>
</compile_context>

<pallas_src>
import functools
import math

import jax
import jax.numpy as jnp
import numpy as np
from jax.experimental import pallas as pl
from jax.experimental.pallas import tpu as pltpu

_LANE = 128
_SUBLANE = 8
# Conservative double-buffered working-set budget: fits v5e's 16 MiB default
# scoped-VMEM limit and leaves headroom on v6e (32 MiB scoped / 128 MiB
# physical) and v7x (32 MiB scoped / 64 MiB physical).  Blocks end up ~1 MiB
# per stream, which is already ~85% of the measured HBM roofline.
_VMEM_BUDGET = 12 * 1024 * 1024


def _round_up(x, m):
    return ((x + m - 1) // m) * m


def _lane_bytes(d, dtype_bytes=4):
    # VMEM pads the last (lane) dimension to 128 lanes.
    return _round_up(max(int(d), 1), _LANE) * dtype_bytes


def _clamp_tb(tb, batch):
    tb = max(_SUBLANE, (int(tb) // _SUBLANE) * _SUBLANE)
    tb = min(tb, 4096)
    # Keep >= ~4 tiles on large batches so both v7x TensorCores stay busy under
    # dimension_semantics=("parallel",).  Per-step overhead (~0.35 us) is
    # negligible at these tile sizes.
    if batch >= 1024:
        tb = min(tb, max(_SUBLANE, _round_up(pl.cdiv(batch, 4), _SUBLANE)))
    tb = min(tb, _round_up(batch, _SUBLANE))
    return tb


def _choose_tb_streaming(batch, dim):
    # 6 f32 streams, double-buffered, plus the (TB, 1) output block.
    row_bytes = 6 * 2 * _lane_bytes(dim) + 2 * 2 * _lane_bytes(1)
    return _clamp_tb(_VMEM_BUDGET // row_bytes, batch)


def _choose_tb_fused(batch, dim, num_ent_p, num_rel_p):
    # VMEM-resident tables (count 2 buffers each to be conservative).
    table_bytes = 2 * (2 * num_ent_p + 2 * num_rel_p) * _lane_bytes(dim)
    budget = max(_VMEM_BUDGET - table_bytes, 2 * 1024 * 1024)
    row_bytes = (2 * 2 * _lane_bytes(3)                               # idx + out blocks
                 + 2 * _lane_bytes(num_ent_p) + _lane_bytes(num_rel_p)  # one-hot temps
                 + 9 * _lane_bytes(dim))                              # gathered rows + temps
    return _clamp_tb(budget // row_bytes, batch)


def _use_fused_gathers(params):
    num_ent, dim = params.emb_ent_real.shape
    num_rel = params.rel_cos.shape[0]
    table_bytes = 2 * (2 * num_ent + 2 * num_rel) * _lane_bytes(dim)
    # Keep the one-hot gather matmuls cheap and the resident tables small.
    return num_ent <= 1024 and num_rel <= 1024 and table_bytes <= 6 * 1024 * 1024


# ---------------------------------------------------------------------------
# Kernels
# ---------------------------------------------------------------------------

def _rotate_fused_kernel(idx_ref, er_ref, ei_ref, rc_ref, rs_ref, out_ref, *,
                         gamma):
    idx = idx_ref[...]                       # (TB, 3) int32
    tb = idx.shape[0]
    num_ent = er_ref.shape[0]
    num_rel = rc_ref.shape[0]

    # One-hot gather on the MXU (it is otherwise idle; HIGHEST precision keeps
    # the f32 gather exact).
    ent_iota = jax.lax.broadcasted_iota(jnp.int32, (tb, num_ent), 1)
    rel_iota = jax.lax.broadcasted_iota(jnp.int32, (tb, num_rel), 1)
    oh_head = (idx[:, 0:1] == ent_iota).astype(jnp.float32)
    oh_tail = (idx[:, 1:2] == ent_iota).astype(jnp.float32)
    oh_rel = (idx[:, 2:3] == rel_iota).astype(jnp.float32)

    er = er_ref[...]
    ei = ei_ref[...]
    dot = functools.partial(jnp.dot, preferred_element_type=jnp.float32,
                            precision=jax.lax.Precision.HIGHEST)
    hr = dot(oh_head, er)
    hi = dot(oh_head, ei)
    tr = dot(oh_tail, er)
    ti = dot(oh_tail, ei)
    rel_real = dot(oh_rel, rc_ref[...])
    rel_img = dot(oh_rel, rs_ref[...])

    real_score = hr * rel_real - hi * rel_img - tr
    img_score = hr * rel_img + hi * rel_real - ti
    # torch.stack([real, img], 0).norm(dim=0) == sqrt(real^2 + img^2) elementwise
    norm = jnp.sqrt(real_score * real_score + img_score * img_score)
    out_ref[...] = jax.nn.sigmoid(gamma - jnp.sum(norm, axis=1, keepdims=True))


def _rotate_stream_kernel(hr_ref, tr_ref, hi_ref, ti_ref, rc_ref, rs_ref,
                          out_ref, *, gamma):
    hr = hr_ref[...]
    hi = hi_ref[...]
    rel_real = rc_ref[...]   # cos(emb_rel / phase), precomputed outside
    rel_img = rs_ref[...]    # sin(emb_rel / phase), precomputed outside
    real_score = hr * rel_real - hi * rel_img - tr_ref[...]
    img_score = hr * rel_img + hi * rel_real - ti_ref[...]
    norm = jnp.sqrt(real_score * real_score + img_score * img_score)
    out_ref[...] = jax.nn.sigmoid(gamma - jnp.sum(norm, axis=1, keepdims=True))


# ---------------------------------------------------------------------------
# Wrappers
# ---------------------------------------------------------------------------

def _rotate_forward_fused(params, x_pad):
    batch = x_pad.shape[0]                 # already a multiple of 8
    num_ent, dim = params.emb_ent_real.shape
    num_rel = params.rel_cos.shape[0]
    num_ent_p = _round_up(num_ent, _SUBLANE)
    num_rel_p = _round_up(num_rel, _SUBLANE)

    def pad_rows(t, n):
        return t if t.shape[0] == n else jnp.pad(t, ((0, n - t.shape[0]), (0, 0)))

    er = pad_rows(params.emb_ent_real, num_ent_p)
    ei = pad_rows(params.emb_ent_img, num_ent_p)
    rc = pad_rows(params.rel_cos, num_rel_p)
    rs = pad_rows(params.rel_sin, num_rel_p)

    tb = _choose_tb_fused(batch, dim, num_ent_p, num_rel_p)
    grid = (pl.cdiv(batch, tb),)

    out = pl.pallas_call(
        functools.partial(_rotate_fused_kernel, gamma=params.gamma),
        out_shape=jax.ShapeDtypeStruct((batch, 1), jnp.float32),
        grid_spec=pltpu.PrefetchScalarGridSpec(
            num_scalar_prefetch=0,
            grid=grid,
            in_specs=[
                pl.BlockSpec((tb, 3), lambda i: (i, 0)),
                # Tables: constant block index -> DMA'd once, stay resident.
                pl.BlockSpec((num_ent_p, dim), lambda i: (0, 0)),
                pl.BlockSpec((num_ent_p, dim), lambda i: (0, 0)),
                pl.BlockSpec((num_rel_p, dim), lambda i: (0, 0)),
                pl.BlockSpec((num_rel_p, dim), lambda i: (0, 0)),
            ],
            out_specs=pl.BlockSpec((tb, 1), lambda i: (i, 0)),
        ),
        compiler_params=pltpu.CompilerParams(
            dimension_semantics=("parallel",)),
    )(x_pad, er, ei, rc, rs)
    return out[:, 0]


def _rotate_forward_streaming(params, x_pad):
    # Gathers happen in XLA glue; used only when the tables are too large to
    # keep VMEM-resident.  x_pad is already sublane-padded so the gathered
    # streams need no further padding (grid uses cdiv + partial last block).
    head_real = params.emb_ent_real[x_pad[:, 0]]
    tail_real = params.emb_ent_real[x_pad[:, 1]]
    head_img = params.emb_ent_img[x_pad[:, 0]]
    tail_img = params.emb_ent_img[x_pad[:, 1]]
    rel_cos = params.rel_cos[x_pad[:, 2]]
    rel_sin = params.rel_sin[x_pad[:, 2]]

    batch, dim = head_real.shape
    tb = _choose_tb_streaming(batch, dim)
    grid = (pl.cdiv(batch, tb),)
    tile_spec = pl.BlockSpec((tb, dim), lambda i: (i, 0))

    out = pl.pallas_call(
        functools.partial(_rotate_stream_kernel, gamma=params.gamma),
        out_shape=jax.ShapeDtypeStruct((batch, 1), jnp.float32),
        grid_spec=pltpu.PrefetchScalarGridSpec(
            num_scalar_prefetch=0,
            grid=grid,
            in_specs=[tile_spec] * 6,
            out_specs=pl.BlockSpec((tb, 1), lambda i: (i, 0)),
        ),
        compiler_params=pltpu.CompilerParams(
            dimension_semantics=("parallel",)),
    )(head_real, tail_real, head_img, tail_img, rel_cos, rel_sin)
    return out[:, 0]


class RotatEParams:
    """Deterministic parameter container mirroring RotatEModel.__init__."""

    def __init__(self, num1, num2, output_dim, gamma, key):
        k1, k2, k3 = jax.random.split(key, 3)

        def xavier_normal(k, shape):
            fan_out, fan_in = shape  # Embedding weight is (num_embeddings, dim)
            std = math.sqrt(2.0 / (fan_in + fan_out))
            return std * jax.random.normal(k, shape, dtype=jnp.float32)

        self.emb_ent_real = xavier_normal(k1, (num1, output_dim))
        self.emb_ent_img = xavier_normal(k2, (num1, output_dim))
        self.emb_rel = xavier_normal(k3, (num2, output_dim))
        self.gamma = float(gamma)
        self.embedding_range = (gamma + 2.0) / output_dim
        self.phase = self.embedding_range / float(np.pi)

        # Hoisted relation trig: cos/sin over the tiny (num2, D) table, computed
        # once so the kernel pays no in-kernel divide/cos/sin.
        phase_rel = self.emb_rel / self.phase
        self.rel_cos = jnp.cos(phase_rel)
        self.rel_sin = jnp.sin(phase_rel)


def rotate_model_forward(params: RotatEParams, x, rel=None, *,
                         force_streaming=False):
    # x: (B, 3) int32 -> [head_idx, tail_idx, rel_idx]
    x = jnp.asarray(x, dtype=jnp.int32)
    batch = x.shape[0]
    if rel is not None:
        rel_col = jnp.full((batch, 1), int(rel), dtype=jnp.int32)
        x = jnp.concatenate([x[:, :2], rel_col], axis=1)
    # Pad only the tiny (B, 3) index array (O(B) bytes) so the batch dim seen
    # by every downstream array is sublane-aligned.  Padded rows use index 0
    # (a valid row) and their outputs are sliced away below.
    b_pad = _round_up(batch, _SUBLANE)
    if b_pad != batch:
        x = jnp.pad(x, ((0, b_pad - batch), (0, 0)))

    if force_streaming or not _use_fused_gathers(params):
        out = _rotate_forward_streaming(params, x)
    else:
        out = _rotate_forward_fused(params, x)
    return out[:batch]


def rotate_model_reference(params: RotatEParams, x) -> jnp.ndarray:
    x = jnp.asarray(x, dtype=jnp.int32)
    head_real = params.emb_ent_real[x[:, 0]]
    tail_real = params.emb_ent_real[x[:, 1]]
    head_img = params.emb_ent_img[x[:, 0]]
    tail_img = params.emb_ent_img[x[:, 1]]
    emb_rel = params.emb_rel[x[:, 2]]
    phase_rel = emb_rel / params.phase
    rel_real = jnp.cos(phase_rel)
    rel_img = jnp.sin(phase_rel)
    real_score = head_real * rel_real - head_img * rel_img - tail_real
    img_score = head_real * rel_img + head_img * rel_real - tail_img
    norm = jnp.sqrt(real_score ** 2 + img_score ** 2)
    return jax.nn.sigmoid(params.gamma - jnp.sum(norm, axis=1))


def _make_batch(key, batch, num_entities, num_relations):
    kh, kt, kr = jax.random.split(key, 3)
    return jnp.stack([
        jax.random.randint(kh, (batch,), 0, num_entities),
        jax.random.randint(kt, (batch,), 0, num_entities),
        jax.random.randint(kr, (batch,), 0, num_relations),
    ], axis=1).astype(jnp.int32)


if __name__ == "__main__":
    key = jax.random.PRNGKey(0)
    pkey, xkey1, xkey2 = jax.random.split(key, 3)

    num_entities = 16   # num1
    num_relations = 4   # num2
    output_dim = 32
    gamma = 12.0

    params = RotatEParams(num_entities, num_relations, output_dim, gamma, pkey)

    # Case 1: tiny batch -> fused path, single exact tile.
    x_small = _make_batch(xkey1, 8, num_entities, num_relations)
    out_small = jax.block_until_ready(rotate_model_forward(params, x_small))
    ref_small = rotate_model_reference(params, x_small)
    np.testing.assert_allclose(np.asarray(out_small), np.asarray(ref_small),
                               rtol=1e-5, atol=1e-5)

    # Case 2: batch not a multiple of the tile -> fused path with index
    # padding + partial last block.
    x_big = _make_batch(xkey2, 300, num_entities, num_relations)
    out_big = jax.block_until_ready(rotate_model_forward(params, x_big))
    ref_big = rotate_model_reference(params, x_big)
    np.testing.assert_allclose(np.asarray(out_big), np.asarray(ref_big),
                               rtol=1e-5, atol=1e-5)

    # Case 3: exercise the streaming fallback (used when embedding tables are
    # too large to keep VMEM-resident).
    out_stream = jax.block_until_ready(
        rotate_model_forward(params, x_big, force_streaming=True))
    np.testing.assert_allclose(np.asarray(out_stream), np.asarray(ref_big),
                               rtol=1e-5, atol=1e-5)

    # Case 4: the `rel` override from the PyTorch forward signature.
    out_rel = jax.block_until_ready(rotate_model_forward(params, x_big, rel=1))
    x_rel = jnp.concatenate(
        [x_big[:, :2], jnp.full((x_big.shape[0], 1), 1, jnp.int32)], axis=1)
    ref_rel = rotate_model_reference(params, x_rel)
    np.testing.assert_allclose(np.asarray(out_rel), np.asarray(ref_rel),
                               rtol=1e-5, atol=1e-5)

    print("KERNEL_OK")
</pallas_src>

<mosaic_0001>
module attributes {stable_mosaic.version = 11 : i64} {
  func.func @_rotate_fused_kernel(%arg0: i32, %arg1: memref<8x3xi32, #tpu.memory_space<vmem>>, %arg2: memref<16x32xf32, #tpu.memory_space<vmem>>, %arg3: memref<16x32xf32, #tpu.memory_space<vmem>>, %arg4: memref<8x32xf32, #tpu.memory_space<vmem>>, %arg5: memref<8x32xf32, #tpu.memory_space<vmem>>, %arg6: memref<8x1xf32, #tpu.memory_space<vmem>>) attributes {dimension_semantics = [#tpu.dimension_semantics<parallel>], iteration_bounds = array<i64: 1>, scalar_prefetch = 0 : i64, scratch_operands = 0 : i64, tpu.core_type = #tpu.core_type<tc>, window_params = [{transform_indices = @transform_0, window_bounds = array<i64: 8, 3>}, {pipeline_mode = #tpu.pipeline_mode<synchronous>, transform_indices = @transform_1, window_bounds = array<i64: 16, 32>}, {pipeline_mode = #tpu.pipeline_mode<synchronous>, transform_indices = @transform_2, window_bounds = array<i64: 16, 32>}, {pipeline_mode = #tpu.pipeline_mode<synchronous>, transform_indices = @transform_3, window_bounds = array<i64: 8, 32>}, {pipeline_mode = #tpu.pipeline_mode<synchronous>, transform_indices = @transform_4, window_bounds = array<i64: 8, 32>}, {transform_indices = @transform_5, window_bounds = array<i64: 8, 1>}]} {
    %c0 = arith.constant 0 : index
    %c0_0 = arith.constant 0 : index
    %0 = vector.load %arg1[%c0, %c0_0] : memref<8x3xi32, #tpu.memory_space<vmem>>, vector<8x3xi32>
    %1 = tpu.iota {dimensions = array<i32: 1>} : vector<8x16xi32>
    %2 = tpu.iota {dimensions = array<i32: 1>} : vector<8x8xi32>
    %3 = vector.extract_strided_slice %0 {offsets = [0, 0], sizes = [8, 1], strides = [1, 1]} : vector<8x3xi32> to vector<8x1xi32>
    %4 = vector.broadcast %3 : vector<8x1xi32> to vector<8x16xi32>
    %5 = arith.cmpi eq, %4, %1 : vector<8x16xi32>
    %6 = arith.extui %5 : vector<8x16xi1> to vector<8x16xi32>
    %7 = arith.sitofp %6 : vector<8x16xi32> to vector<8x16xf32>
    %8 = vector.extract_strided_slice %0 {offsets = [0, 1], sizes = [8, 1], strides = [1, 1]} : vector<8x3xi32> to vector<8x1xi32>
    %9 = vector.broadcast %8 : vector<8x1xi32> to vector<8x16xi32>
    %10 = arith.cmpi eq, %9, %1 : vector<8x16xi32>
    %11 = arith.extui %10 : vector<8x16xi1> to vector<8x16xi32>
    %12 = arith.sitofp %11 : vector<8x16xi32> to vector<8x16xf32>
    %13 = vector.extract_strided_slice %0 {offsets = [0, 2], sizes = [8, 1], strides = [1, 1]} : vector<8x3xi32> to vector<8x1xi32>
    %14 = vector.broadcast %13 : vector<8x1xi32> to vector<8x8xi32>
    %15 = arith.cmpi eq, %14, %2 : vector<8x8xi32>
    %16 = arith.extui %15 : vector<8x8xi1> to vector<8x8xi32>
    %17 = arith.sitofp %16 : vector<8x8xi32> to vector<8x8xf32>
    %c0_1 = arith.constant 0 : index
    %c0_2 = arith.constant 0 : index
    %18 = vector.load %arg2[%c0_1, %c0_2] : memref<16x32xf32, #tpu.memory_space<vmem>>, vector<16x32xf32>
    %c0_3 = arith.constant 0 : index
    %c0_4 = arith.constant 0 : index
    %19 = vector.load %arg3[%c0_3, %c0_4] : memref<16x32xf32, #tpu.memory_space<vmem>>, vector<16x32xf32>
    %cst = arith.constant dense<0.000000e+00> : vector<8x32xf32>
    %20 = tpu.matmul %7, %18, %cst {dimension_numbers = #tpu.dot_dimension_numbers<[1], [0], [0], [1], [0, 0, 1, 1], [], []>, precision = #tpu.contract_precision<fp32>} : vector<8x16xf32>, vector<16x32xf32>, vector<8x32xf32> -> vector<8x32xf32>
    %cst_5 = arith.constant dense<0.000000e+00> : vector<8x32xf32>
    %21 = tpu.matmul %7, %19, %cst_5 {dimension_numbers = #tpu.dot_dimension_numbers<[1], [0], [0], [1], [0, 0, 1, 1], [], []>, precision = #tpu.contract_precision<fp32>} : vector<8x16xf32>, vector<16x32xf32>, vector<8x32xf32> -> vector<8x32xf32>
    %cst_6 = arith.constant dense<0.000000e+00> : vector<8x32xf32>
    %22 = tpu.matmul %12, %18, %cst_6 {dimension_numbers = #tpu.dot_dimension_numbers<[1], [0], [0], [1], [0, 0, 1, 1], [], []>, precision = #tpu.contract_precision<fp32>} : vector<8x16xf32>, vector<16x32xf32>, vector<8x32xf32> -> vector<8x32xf32>
    %cst_7 = arith.constant dense<0.000000e+00> : vector<8x32xf32>
    %23 = tpu.matmul %12, %19, %cst_7 {dimension_numbers = #tpu.dot_dimension_numbers<[1], [0], [0], [1], [0, 0, 1, 1], [], []>, precision = #tpu.contract_precision<fp32>} : vector<8x16xf32>, vector<16x32xf32>, vector<8x32xf32> -> vector<8x32xf32>
    %c0_8 = arith.constant 0 : index
    %c0_9 = arith.constant 0 : index
    %24 = vector.load %arg4[%c0_8, %c0_9] : memref<8x32xf32, #tpu.memory_space<vmem>>, vector<8x32xf32>
    %cst_10 = arith.constant dense<0.000000e+00> : vector<8x32xf32>
    %25 = tpu.matmul %17, %24, %cst_10 {dimension_numbers = #tpu.dot_dimension_numbers<[1], [0], [0], [1], [0, 0, 1, 1], [], []>, precision = #tpu.contract_precision<fp32>} : vector<8x8xf32>, vector<8x32xf32>, vector<8x32xf32> -> vector<8x32xf32>
    %c0_11 = arith.constant 0 : index
    %c0_12 = arith.constant 0 : index
    %26 = vector.load %arg5[%c0_11, %c0_12] : memref<8x32xf32, #tpu.memory_space<vmem>>, vector<8x32xf32>
    %cst_13 = arith.constant dense<0.000000e+00> : vector<8x32xf32>
    %27 = tpu.matmul %17, %26, %cst_13 {dimension_numbers = #tpu.dot_dimension_numbers<[1], [0], [0], [1], [0, 0, 1, 1], [], []>, precision = #tpu.contract_precision<fp32>} : vector<8x8xf32>, vector<8x32xf32>, vector<8x32xf32> -> vector<8x32xf32>
    %28 = arith.mulf %20, %25 : vector<8x32xf32>
    %29 = arith.mulf %21, %27 : vector<8x32xf32>
    %30 = arith.subf %28, %29 : vector<8x32xf32>
    %31 = arith.subf %30, %22 : vector<8x32xf32>
    %32 = arith.mulf %20, %27 : vector<8x32xf32>
    %33 = arith.mulf %21, %25 : vector<8x32xf32>
    %34 = arith.addf %32, %33 : vector<8x32xf32>
    %35 = arith.subf %34, %23 : vector<8x32xf32>
    %36 = arith.mulf %31, %31 : vector<8x32xf32>
    %37 = arith.mulf %35, %35 : vector<8x32xf32>
    %38 = arith.addf %36, %37 : vector<8x32xf32>
    %39 = math.sqrt %38 : vector<8x32xf32>
    %cst_14 = arith.constant dense<0.000000e+00> : vector<8xf32>
    %40 = vector.multi_reduction <add>, %39, %cst_14 [1] : vector<8x32xf32> to vector<8xf32>
    %41 = vector.shape_cast %40 : vector<8xf32> to vector<8x1xf32>
    %cst_15 = arith.constant 1.200000e+01 : f32
    %42 = vector.broadcast %cst_15 : f32 to vector<8x1xf32>
    %43 = arith.subf %42, %41 : vector<8x1xf32>
    %44 = arith.negf %43 : vector<8x1xf32>
    %45 = math.exp %44 : vector<8x1xf32>
    %cst_16 = arith.constant 1.000000e+00 : f32
    %46 = vector.broadcast %cst_16 : f32 to vector<8x1xf32>
    %47 = arith.addf %46, %45 : vector<8x1xf32>
    %48 = arith.divf %46, %47 : vector<8x1xf32>
    %c0_17 = arith.constant 0 : index
    %c0_18 = arith.constant 0 : index
    %49 = vector.load %arg6[%c0_17, %c0_18] : memref<8x1xf32, #tpu.memory_space<vmem>>, vector<8x1xf32>
    tpu.vector_store %arg6[%c0_17, %c0_18], %48 {strides = array<i32>} : memref<8x1xf32, #tpu.memory_space<vmem>>, vector<8x1xf32>,
    return
  }
  func.func @transform_0(%arg0: i32) -> (i32, i32) {
    %c0_i32 = arith.constant 0 : i32
    %c0_i32_0 = arith.constant 0 : i32
    return %arg0, %c0_i32 : i32, i32
  }
  func.func @transform_1(%arg0: i32) -> (i32, i32) {
    %c0_i32 = arith.constant 0 : i32
    %c0_i32_0 = arith.constant 0 : i32
    %c0_i32_1 = arith.constant 0 : i32
    return %c0_i32, %c0_i32_0 : i32, i32
  }
  func.func @transform_2(%arg0: i32) -> (i32, i32) {
    %c0_i32 = arith.constant 0 : i32
    %c0_i32_0 = arith.constant 0 : i32
    %c0_i32_1 = arith.constant 0 : i32
    return %c0_i32, %c0_i32_0 : i32, i32
  }
  func.func @transform_3(%arg0: i32) -> (i32, i32) {
    %c0_i32 = arith.constant 0 : i32
    %c0_i32_0 = arith.constant 0 : i32
    %c0_i32_1 = arith.constant 0 : i32
    return %c0_i32, %c0_i32_0 : i32, i32
  }
  func.func @transform_4(%arg0: i32) -> (i32, i32) {
    %c0_i32 = arith.constant 0 : i32
    %c0_i32_0 = arith.constant 0 : i32
    %c0_i32_1 = arith.constant 0 : i32
    return %c0_i32, %c0_i32_0 : i32, i32
  }
  func.func @transform_5(%arg0: i32) -> (i32, i32) {
    %c0_i32 = arith.constant 0 : i32
    %c0_i32_0 = arith.constant 0 : i32
    return %arg0, %c0_i32 : i32, i32
  }
}

</mosaic_0001>

<bundles_post_ra>
// kernel: tpu_custom_call.1
= control target key start
LH: loop header
LB: loop body
LE: loop exit
PB: predicated region body
PF: predicated region fallthrough
CT: control target
= control target key end

     0   :  { %10 = vsyncpa [#allocation3], 0  ;;  %s3645_s0 = inlined_call_operand.vmem [shape: s32[8,3], index: 0, kind: input, shape index: {}]   ;;  %s3646_s1 = inlined_call_operand.hbm [shape: f32[16,32], index: 1, kind: input, shape index: {}]   ;;  %s3647_s2 = inlined_call_operand.hbm [shape: f32[16,32], index: 2, kind: input, shape index: {}]   ;;  %s3648_s3 = inlined_call_operand.vmem [shape: f32[8,32], index: 3, kind: input, shape index: {}]   ;;  %s3649_s4 = inlined_call_operand.vmem [shape: f32[8,32], index: 4, kind: input, shape index: {}]   ;;  %s3650_s5 = inlined_call_operand.vmem [shape: f32[8,1], index: 5, kind: output, shape index: {}]  }
   0x1   :  { %11 = vsyncpa [#allocation5], 0  ;;  %s3260_s18 = smov [#allocation2]  }
   0x2   :  { %s19_s19 = sshll.u32 %s3260_s18, 4  ;;  %s20_s19 = int_to_ptr.vmem [resolvable:$true] %s19_s19 }
   0x3   :  { %s3224_s20 = scalar_lea.vmem %s20_s19, 256  ;;  %p3229_p1 = scmp.lt.s32.totalorder %s20_s19, %s20_s19 }
   0x4   :  { %p3225_p0 = scmp.ne.s32.totalorder %s20_s19, %s3224_s20  ;;  %p3230_p2 = scmp.lt.s32.totalorder %s3224_s20, %s3224_s20 }
   0x6   :  { %p3231_p3 = por %p3230_p2, %p3229_p1 }
   0x8   :  { %p3232_p4 = pnand %p3231_p3, %p3225_p0 }
   0xa   :  { %3235 = shalt.err (!%p3232_p4)
}
   0xb   :  { %s3261_s21 = smov 128   ;;  %s3262_s22 = smov 8  }
   0xc   :  { %25 = dma.hbm_to_vmem [thread:$0]  %s3646_s1, 256, %s20_s19, [#allocation3], %s3261_s21, %s3261_s21, %s3262_s22  }
   0xd   :  { %s3263_s25 = smov [#allocation4]  }
   0xe   :  { %s31_s26 = sshll.u32 %s3263_s25, 4  ;;  %s32_s26 = int_to_ptr.vmem [resolvable:$true] %s31_s26 }
   0xf   :  { %s3244_s27 = scalar_lea.vmem %s32_s26, 256  ;;  %p3249_p6 = scmp.lt.s32.totalorder %s32_s26, %s32_s26 }
  0x10   :  { %p3245_p5 = scmp.ne.s32.totalorder %s32_s26, %s3244_s27  ;;  %p3250_p7 = scmp.lt.s32.totalorder %s3244_s27, %s3244_s27 }
  0x12   :  { %p3251_p8 = por %p3250_p7, %p3249_p6 }
  0x14   :  { %p3252_p9 = pnand %p3251_p8, %p3245_p5 }
  0x16   :  { %3255 = shalt.err (!%p3252_p9)
}
  0x17   :  { %37 = dma.hbm_to_vmem [thread:$0]  %s3647_s2, 256, %s32_s26, [#allocation5], %s3261_s21, %s3261_s21, %s3262_s22  }
  0x18   :  { %3256 = dma.done.wait [#allocation3], 256  }
  0x19   :  { %3257 = vsyncadd [#allocation3], 4294967040 }
  0x1a   :  { %3258 = dma.done.wait [#allocation5], 256  }
  0x1b   :  { %3259 = vsyncadd [#allocation5], 4294967040  ;;  %v3264_v0 = vmov 0   ;;  %v3265_v1 = vmov 2   ;;  %v3266_v2 = vmov 0.0   ;;  %vm3267_vm0 = vmmov 0  }
  0x1c   :  { %3206 = vset.pattern.permute.xlu0 %v3264_v0  ;;  %3208 = vset.pattern.permute.xlu1 %v3265_v1  ;;  %v48_v3 = vld [vmem:[%s3645_s0] sm:$0xff]  ;;  %v70_v4 = vld [vmem:[#allocation2 + $0x8] sm:$0xff]  ;;  %v3268_v10 = vmov 1   ;;  %v72_v17 = vld [vmem:[#allocation4 + $0x8] sm:$0xff]  ;;  %v49_v18 = vlaneseq  ;;  %vm73_vm1 = vcmask 130048   ;;  %vm1917_vm5 = vcmask 64512  }
  0x1d   :  { %2976 = vmatprep.subr.mxu1 %v3266_v2  ;;  %2969 = vmatprep.subr.mxu0 %v3266_v2  ;;  %v69_v5 = vld [vmem:[#allocation2] sm:$0xff]  ;;  %v3314_v6 = vand.u32 4294901760, %v70_v4  ;;  %v3346_v19 = vand.u32 4294901760, %v72_v17  ;;  %v71_v20 = vld [vmem:[#allocation4] sm:$0xff]  ;;  %vm2832_vm7 = vcmask 261120   ;;  %vm2843_vm9 = vcmask 7168  }
  0x1e   :  { %2980 = vmatprep.mubr.msk.f32.mxu1 %vm3267_vm0, %v3266_v2  ;;  %2973 = vmatprep.mubr.msk.f32.mxu0 %vm3267_vm0, %v3266_v2  ;;  %v3316_v7 = vand.u32 4294901760, %v69_v5  ;;  %v3348_v21 = vand.u32 127, %v49_v18  ;;  %v3350_v22 = vand.u32 4294901760, %v71_v20  ;;  %v1916_v45 = vld [vmem:[%s3648_s3] sm:$0xff] }
  0x1f   :  { %52 = vperm.xlu0 %3206, %v48_v3   ;;  %64 = vperm.xlu1 %3208, %v48_v3   ;;  %v3319_v8 = vsub.f32 %v70_v4, %v3314_v6  ;;  %v3353_v23 = vsub.f32 %v72_v17, %v3346_v19  ;;  %v3498_v46 = vand.u32 4294901760, %v1916_v45  ;;  %v2367_v51 = vld [vmem:[%s3649_s4] sm:$0xff] }
  0x20   :  { %v3322_v9 = vsub.f32 %v69_v5, %v3316_v7  ;;  %2970 = vmatpush3.msra.mxu0 %v3314_v6  ;;  %v3357_v25 = vsub.f32 %v71_v20, %v3350_v22  ;;  %v3549_v54 = vand.u32 4294901760, %v2367_v51 }
  0x21   :  { %2971 = vmatprep.subr.mxu0 %v3266_v2  ;;  %v3327_v11 = vand.u32 4294901760, %v3319_v8  ;;  %v3363_v27 = vand.u32 4294901760, %v3353_v23  ;;  %v3511_v47 = vsub.f32 %v1916_v45, %v3498_v46 }
  0x22   :  { %v3330_v12 = vand.u32 4294901760, %v3322_v9  ;;  %2972 = vmatpush3.msra.mxu0 %v3316_v7  ;;  %v3376_v30 = vand.u32 4294901760, %v3357_v25  ;;  %v2476_v57 = vsub.f32 %v2367_v51, %v3549_v54 }
  0x23   :  { %3207 = vset.pattern.permute.xlu0 %v3268_v10  ;;  %2983 = vmatprep.subr.mxu0 %v3266_v2  ;;  %v186_v13 = vsub.f32 %v3319_v8, %v3327_v11  ;;  %v645_v32 = vsub.f32 %v3353_v23, %v3363_v27  ;;  %v2030_v49 = vand.u32 4294901760, %v3511_v47 }
  0x24   :  { %58 = vperm.xlu0 %3207, %v48_v3   ;;  %v193_v14 = vsub.f32 %v3322_v9, %v3330_v12  ;;  %v652_v34 = vsub.f32 %v3357_v25, %v3376_v30  ;;  %v2477_v59 = vand.u32 4294901760, %v2476_v57 }
  0x25   :  { %v3338_v15 = vand.u32 4294901760, %v186_v13  ;;  %v3390_v36 = vand.u32 4294901760, %v645_v32  ;;  %v2031_v52 = vsub.f32 %v3511_v47, %v2030_v49 }
  0x26   :  { %v3340_v16 = vand.u32 4294901760, %v193_v14  ;;  %v3397_v37 = vand.u32 4294901760, %v652_v34  ;;  %v2478_v61 = vsub.f32 %v2476_v57, %v2477_v59 }
  0x27   :  { %2977 = vmatpush3.msra.mxu1 %v3338_v15  ;;  %v2032_v55 = vand.u32 4294901760, %v2031_v52 }
  0x28   :  { %3209 = vset.pattern.permute.xlu0 %v3265_v1  ;;  %2978 = vmatprep.subr.mxu1 %v3266_v2  ;;  %v2479_v63 = vand.u32 4294901760, %v2478_v61 }
  0x29   :  { %2979 = vmatpush3.msra.mxu1 %v3340_v16 }
  0x2a   :  { %2990 = vmatprep.subr.mxu1 %v3266_v2 }
  0x9a   :  { %v53_v24 = vpop.permute.xlu0 %52  ;;  %v65_v48 = vpop.permute.xlu1 %64 }
  0x9b   :  { %vm54_vm2 = vcmp.eq.s32.totalorder %v53_v24, %v3348_v21  ;;  %vm66_vm4 = vcmp.eq.s32.totalorder %v65_v48, %v3348_v21 }
  0x9c   :  { %v3360_v26 = vsel %vm54_vm2, 1.0, %v3266_v2  ;;  %v3533_v50 = vsel %vm66_vm4, 1.0, %v3266_v2 }
  0x9d   :  { %v75_v28 = vsel %vm73_vm1, %v3360_v26, 0  ;;  %2981 = vmatmul.mubr.msk.f32.vlgmr.msra.gmra.mxu1 %vm73_vm1, %v3360_v26  ;;  %v1919_v53 = vsel %vm1917_vm5, %v3533_v50, 0 }
  0x9e   :  { %v3369_v29 = vsub.f32 %v75_v28, %v75_v28  ;;  %2991 = vmatpush3.msra.mxu1 %v3314_v6  ;;  %2994 = vmatprep.mubr.msk.f32.mxu1 %vm3267_vm0, %v3266_v2  ;;  %v1988_v56 = vsub.f32 %v1919_v53, %v1919_v53 }
  0x9f   :  { %2992 = vmatprep.subr.mxu1 %v3266_v2  ;;  %v59_v38 = vpop.permute.xlu0 %58 }
  0xa0   :  { %2993 = vmatpush3.msra.mxu1 %v3316_v7  ;;  %v146_v31 = vand.u32 4294901760, %v3369_v29  ;;  %vm60_vm3 = vcmp.eq.s32.totalorder %v59_v38, %v3348_v21  ;;  %v1989_v58 = vand.u32 4294901760, %v1988_v56 }
  0xa1   :  { %3004 = vmatprep.subr.mxu1 %v3266_v2  ;;  %v3434_v39 = vsel %vm60_vm3, 1.0, %v3266_v2 }
  0xa2   :  { %2995 = vmatmul.mubr.f32.vlgmr.msra.gmra.mxu1 %v146_v31  ;;  %v147_v33 = vsub.f32 %v3369_v29, %v146_v31  ;;  %v996_v40 = vsel %vm73_vm1, %v3434_v39, 0  ;;  %v1990_v60 = vsub.f32 %v1988_v56, %v1989_v58 }
  0xa3   :  { %3005 = vmatpush3.msra.mxu1 %v3314_v6  ;;  %3008 = vmatprep.mubr.msk.f32.mxu1 %vm3267_vm0, %v3266_v2  ;;  %v3452_v41 = vsub.f32 %v996_v40, %v996_v40 }
  0xa4   :  { %3006 = vmatprep.subr.mxu1 %v3266_v2  ;;  %v148_v35 = vand.u32 4294901760, %v147_v33  ;;  %v1991_v62 = vand.u32 4294901760, %v1990_v60 }
  0xa5   :  { %3007 = vmatpush3.msra.mxu1 %v3316_v7  ;;  %v1067_v42 = vand.u32 4294901760, %v3452_v41 }
  0xa6   :  { %2974 = vmatmul.mubr.f32.vlgmr.msra.gmra.mxu0 %v148_v35  ;;  %3009 = vmatmul.mubr.msk.f32.vlgmr.msra.gmra.mxu1 %vm73_vm1, %v3360_v26 }
  0xa7   :  { %2984 = vmatpush3.msra.mxu0 %v3319_v8  ;;  %3018 = vmatprep.subr.mxu1 %v3266_v2  ;;  %v1068_v43 = vsub.f32 %v3452_v41, %v1067_v42 }
  0xa8   :  { %2985 = vmatprep.subr.mxu0 %v3266_v2  ;;  %3019 = vmatpush3.msra.mxu1 %v3390_v36 }
  0xa9   :  { %2986 = vmatpush3.msra.mxu0 %v3322_v9  ;;  %3020 = vmatprep.subr.mxu1 %v3266_v2  ;;  %v1069_v44 = vand.u32 4294901760, %v1068_v43 }
  0xaa   :  { %2987 = vmatprep.mubr.msk.f32.mxu0 %vm3267_vm0, %v3266_v2  ;;  %2997 = vmatprep.subr.mxu0 %v3266_v2 }
  0xab   :  { %3021 = vmatpush3.msra.mxu1 %v3397_v37  ;;  %3022 = vmatprep.mubr.msk.f32.mxu1 %vm3267_vm0, %v3266_v2 }
  0xac   :  { %2988 = vmatmul.mubr.f32.vlgmr.msra.gmra.mxu0 %v3369_v29  ;;  %3023 = vmatmul.mubr.msk.f32.vlgmr.msra.gmra.mxu1 %vm73_vm1, %v3360_v26 }
  0xad   :  { %2998 = vmatpush3.msra.mxu0 %v3327_v11  ;;  %3032 = vmatprep.subr.mxu1 %v3266_v2 }
  0xae   :  { %2999 = vmatprep.subr.mxu0 %v3266_v2  ;;  %3033 = vmatpush3.msra.mxu1 %v3346_v19 }
  0xaf   :  { %3000 = vmatpush3.msra.mxu0 %v3330_v12  ;;  %3034 = vmatprep.subr.mxu1 %v3266_v2 }
  0xb0   :  { %3001 = vmatprep.mubr.msk.f32.mxu0 %vm3267_vm0, %v3266_v2  ;;  %3011 = vmatprep.subr.mxu0 %v3266_v2 }
  0xb1   :  { %3035 = vmatpush3.msra.mxu1 %v3350_v22  ;;  %3036 = vmatprep.mubr.msk.f32.mxu1 %vm3267_vm0, %v3266_v2 }
  0xb2   :  { %3002 = vmatmul.mubr.msk.f32.vlgmr.msra.gmra.mxu0 %vm73_vm1, %v3360_v26  ;;  %3037 = vmatmul.mubr.f32.vlgmr.msra.gmra.mxu1 %v146_v31 }
  0xb3   :  { %3012 = vmatpush3.msra.mxu0 %v3346_v19  ;;  %3046 = vmatprep.subr.mxu1 %v3266_v2 }
  0xb4   :  { %3013 = vmatprep.subr.mxu0 %v3266_v2  ;;  %3047 = vmatpush3.msra.mxu1 %v3346_v19 }
  0xb5   :  { %3014 = vmatpush3.msra.mxu0 %v3350_v22  ;;  %3048 = vmatprep.subr.mxu1 %v3266_v2 }
  0xb6   :  { %3015 = vmatprep.mubr.msk.f32.mxu0 %vm3267_vm0, %v3266_v2  ;;  %3025 = vmatprep.subr.mxu0 %v3266_v2 }
  0xb7   :  { %3049 = vmatpush3.msra.mxu1 %v3350_v22  ;;  %3050 = vmatprep.mubr.msk.f32.mxu1 %vm3267_vm0, %v3266_v2 }
  0xb8   :  { %3016 = vmatmul.mubr.f32.vlgmr.msra.gmra.mxu0 %v148_v35  ;;  %3051 = vmatmul.mubr.msk.f32.vlgmr.msra.gmra.mxu1 %vm73_vm1, %v3360_v26 }
  0xb9   :  { %3026 = vmatpush3.msra.mxu0 %v3353_v23  ;;  %3060 = vmatprep.subr.mxu1 %v3266_v2 }
  0xba   :  { %3027 = vmatprep.subr.mxu0 %v3266_v2  ;;  %3061 = vmatpush3.msra.mxu1 %v3338_v15 }
  0xbb   :  { %3028 = vmatpush3.msra.mxu0 %v3357_v25  ;;  %3062 = vmatprep.subr.mxu1 %v3266_v2 }
  0xbc   :  { %3029 = vmatprep.mubr.msk.f32.mxu0 %vm3267_vm0, %v3266_v2  ;;  %3039 = vmatprep.subr.mxu0 %v3266_v2 }
  0xbd   :  { %3063 = vmatpush3.msra.mxu1 %v3340_v16  ;;  %3064 = vmatprep.mubr.msk.f32.mxu1 %vm3267_vm0, %v3266_v2 }
  0xbe   :  { %3030 = vmatmul.mubr.f32.vlgmr.msra.gmra.mxu0 %v3369_v29  ;;  %3065 = vmatmul.mubr.msk.f32.vlgmr.msra.gmra.mxu1 %vm73_vm1, %v3434_v39 }
  0xbf   :  { %3040 = vmatpush3.msra.mxu0 %v3363_v27  ;;  %3074 = vmatprep.subr.mxu1 %v3266_v2 }
  0xc0   :  { %3041 = vmatprep.subr.mxu0 %v3266_v2  ;;  %3075 = vmatpush3.msra.mxu1 %v3314_v6 }
  0xc1   :  { %3042 = vmatpush3.msra.mxu0 %v3376_v30  ;;  %3076 = vmatprep.subr.mxu1 %v3266_v2 }
  0xc2   :  { %3043 = vmatprep.mubr.msk.f32.mxu0 %vm3267_vm0, %v3266_v2  ;;  %3053 = vmatprep.subr.mxu0 %v3266_v2 }
  0xc3   :  { %3077 = vmatpush3.msra.mxu1 %v3316_v7  ;;  %3078 = vmatprep.mubr.msk.f32.mxu1 %vm3267_vm0, %v3266_v2 }
  0xc4   :  { %3044 = vmatmul.mubr.msk.f32.vlgmr.msra.gmra.mxu0 %vm73_vm1, %v3360_v26  ;;  %3079 = vmatmul.mubr.f32.vlgmr.msra.gmra.mxu1 %v1067_v42 }
  0xc5   :  { %3054 = vmatpush3.msra.mxu0 %v3314_v6  ;;  %3088 = vmatprep.subr.mxu1 %v3266_v2 }
  0xc6   :  { %3055 = vmatprep.subr.mxu0 %v3266_v2  ;;  %3089 = vmatpush3.msra.mxu1 %v3314_v6 }
  0xc7   :  { %3056 = vmatpush3.msra.mxu0 %v3316_v7  ;;  %3090 = vmatprep.subr.mxu1 %v3266_v2 }
  0xc8   :  { %3057 = vmatprep.mubr.msk.f32.mxu0 %vm3267_vm0, %v3266_v2  ;;  %3067 = vmatprep.subr.mxu0 %v3266_v2 }
  0xc9   :  { %3091 = vmatpush3.msra.mxu1 %v3316_v7  ;;  %3092 = vmatprep.mubr.msk.f32.mxu1 %vm3267_vm0, %v3266_v2 }
  0xca   :  { %3058 = vmatmul.mubr.f32.vlgmr.msra.gmra.mxu0 %v1069_v44  ;;  %3093 = vmatmul.mubr.msk.f32.vlgmr.msra.gmra.mxu1 %vm73_vm1, %v3434_v39 }
  0xcb   :  { %3068 = vmatpush3.msra.mxu0 %v3319_v8  ;;  %3102 = vmatprep.subr.mxu1 %v3266_v2 }
  0xcc   :  { %3069 = vmatprep.subr.mxu0 %v3266_v2  ;;  %3103 = vmatpush3.msra.mxu1 %v3390_v36 }
  0xcd   :  { %3070 = vmatpush3.msra.mxu0 %v3322_v9  ;;  %3104 = vmatprep.subr.mxu1 %v3266_v2 }
  0xce   :  { %3071 = vmatprep.mubr.msk.f32.mxu0 %vm3267_vm0, %v3266_v2  ;;  %3081 = vmatprep.subr.mxu0 %v3266_v2 }
  0xcf   :  { %3105 = vmatpush3.msra.mxu1 %v3397_v37  ;;  %3106 = vmatprep.mubr.msk.f32.mxu1 %vm3267_vm0, %v3266_v2 }
  0xd0   :  { %3072 = vmatmul.mubr.f32.vlgmr.msra.gmra.mxu0 %v3452_v41  ;;  %3107 = vmatmul.mubr.msk.f32.vlgmr.msra.gmra.mxu1 %vm73_vm1, %v3434_v39 }
  0xd1   :  { %3082 = vmatpush3.msra.mxu0 %v3327_v11  ;;  %3116 = vmatprep.subr.mxu1 %v3266_v2 }
  0xd2   :  { %3083 = vmatprep.subr.mxu0 %v3266_v2  ;;  %3117 = vmatpush3.msra.mxu1 %v3346_v19 }
  0xd3   :  { %3084 = vmatpush3.msra.mxu0 %v3330_v12  ;;  %3118 = vmatprep.subr.mxu1 %v3266_v2 }
  0xd4   :  { %3085 = vmatprep.mubr.msk.f32.mxu0 %vm3267_vm0, %v3266_v2  ;;  %3095 = vmatprep.subr.mxu0 %v3266_v2 }
  0xd5   :  { %3119 = vmatpush3.msra.mxu1 %v3350_v22  ;;  %3120 = vmatprep.mubr.msk.f32.mxu1 %vm3267_vm0, %v3266_v2 }
  0xd6   :  { %3086 = vmatmul.mubr.msk.f32.vlgmr.msra.gmra.mxu0 %vm73_vm1, %v3434_v39  ;;  %3121 = vmatmul.mubr.f32.vlgmr.msra.gmra.mxu1 %v1067_v42 }
  0xd7   :  { %3096 = vmatpush3.msra.mxu0 %v3346_v19  ;;  %3130 = vmatprep.subr.mxu1 %v3266_v2 }
  0xd8   :  { %3097 = vmatprep.subr.mxu0 %v3266_v2  ;;  %3131 = vmatpush3.msra.mxu1 %v3346_v19 }
  0xd9   :  { %3098 = vmatpush3.msra.mxu0 %v3350_v22  ;;  %3132 = vmatprep.subr.mxu1 %v3266_v2 }
  0xda   :  { %3099 = vmatprep.mubr.msk.f32.mxu0 %vm3267_vm0, %v3266_v2  ;;  %3109 = vmatprep.subr.mxu0 %v3266_v2 }
  0xdb   :  { %3133 = vmatpush3.msra.mxu1 %v3350_v22  ;;  %3134 = vmatprep.mubr.msk.f32.mxu1 %vm3267_vm0, %v3266_v2 }
  0xdc   :  { %3100 = vmatmul.mubr.f32.vlgmr.msra.gmra.mxu0 %v1069_v44  ;;  %3135 = vmatmul.mubr.msk.f32.vlgmr.msra.gmra.mxu1 %vm73_vm1, %v3434_v39 }
  0xdd   :  { %3110 = vmatpush3.msra.mxu0 %v3353_v23  ;;  %3142 = vmatprep.subr.mxu1 %v3266_v2 }
  0xde   :  { %3111 = vmatprep.subr.mxu0 %v3266_v2  ;;  %3113 = vmatprep.mubr.msk.f32.mxu0 %vm3267_vm0, %v3266_v2 }
  0xdf   :  { %3112 = vmatpush3.msra.mxu0 %v3357_v25  ;;  %3143 = vmatpush3.msra.mxu1 %v2032_v55 }
  0xe0   :  { %3123 = vmatprep.subr.mxu0 %v3266_v2  ;;  %3144 = vmatprep.mubr.msk.f32.mxu1 %vm3267_vm0, %v3266_v2 }
  0xe1   :  { %3114 = vmatmul.mubr.f32.vlgmr.msra.gmra.mxu0 %v3452_v41  ;;  %3145 = vmatmul.mubr.msk.f32.vlgmr.msra.gmra.mxu1 %vm1917_vm5, %v3533_v50 }
  0xe2   :  { %3124 = vmatpush3.msra.mxu0 %v3363_v27  ;;  %3152 = vmatprep.subr.mxu1 %v3266_v2 }
  0xe3   :  { %3125 = vmatprep.subr.mxu0 %v3266_v2  ;;  %3127 = vmatprep.mubr.msk.f32.mxu0 %vm3267_vm0, %v3266_v2 }
  0xe4   :  { %3126 = vmatpush3.msra.mxu0 %v3376_v30  ;;  %3153 = vmatpush3.msra.mxu1 %v3498_v46 }
  0xe5   :  { %3137 = vmatprep.subr.mxu0 %v3266_v2  ;;  %3154 = vmatprep.mubr.msk.f32.mxu1 %vm3267_vm0, %v3266_v2 }
  0xe6   :  { %3128 = vmatmul.mubr.msk.f32.vlgmr.msra.gmra.mxu0 %vm73_vm1, %v3434_v39  ;;  %3155 = vmatmul.mubr.f32.vlgmr.msra.gmra.mxu1 %v1989_v58 }
  0xe7   :  { %3138 = vmatpush3.msra.mxu0 %v3498_v46  ;;  %3162 = vmatprep.subr.mxu1 %v3266_v2 }
  0xe8   :  { %3139 = vmatprep.mubr.msk.f32.mxu0 %vm3267_vm0, %v3266_v2  ;;  %3147 = vmatprep.subr.mxu0 %v3266_v2 }
  0xe9   :  { %3163 = vmatpush3.msra.mxu1 %v3498_v46  ;;  %3164 = vmatprep.mubr.msk.f32.mxu1 %vm3267_vm0, %v3266_v2 }
  0xea   :  { %3140 = vmatmul.mubr.f32.vlgmr.msra.gmra.mxu0 %v1991_v62  ;;  %3165 = vmatmul.mubr.msk.f32.vlgmr.msra.gmra.mxu1 %vm1917_vm5, %v3533_v50 }
  0xeb   :  { %3148 = vmatpush3.msra.mxu0 %v3511_v47  ;;  %3172 = vmatprep.subr.mxu1 %v3266_v2 }
  0xec   :  { %3149 = vmatprep.mubr.msk.f32.mxu0 %vm3267_vm0, %v3266_v2  ;;  %3157 = vmatprep.subr.mxu0 %v3266_v2 }
  0xed   :  { %3173 = vmatpush3.msra.mxu1 %v2479_v63  ;;  %3174 = vmatprep.mubr.msk.f32.mxu1 %vm3267_vm0, %v3266_v2 }
  0xee   :  { %3150 = vmatmul.mubr.f32.vlgmr.msra.gmra.mxu0 %v1988_v56  ;;  %3175 = vmatmul.mubr.msk.f32.vlgmr.msra.gmra.mxu1 %vm1917_vm5, %v3533_v50 }
  0xef   :  { %3158 = vmatpush3.msra.mxu0 %v2030_v49  ;;  %3182 = vmatprep.subr.mxu1 %v3266_v2 }
  0xf0   :  { %3159 = vmatprep.mubr.msk.f32.mxu0 %vm3267_vm0, %v3266_v2  ;;  %3167 = vmatprep.subr.mxu0 %v3266_v2 }
  0xf1   :  { %3183 = vmatpush3.msra.mxu1 %v3549_v54  ;;  %3184 = vmatprep.mubr.msk.f32.mxu1 %vm3267_vm0, %v3266_v2 }
  0xf2   :  { %3160 = vmatmul.mubr.msk.f32.vlgmr.msra.gmra.mxu0 %vm1917_vm5, %v3533_v50  ;;  %3185 = vmatmul.mubr.f32.vlgmr.msra.gmra.mxu1 %v1989_v58 }
  0xf3   :  { %3168 = vmatpush3.msra.mxu0 %v3549_v54  ;;  %3192 = vmatprep.subr.mxu1 %v3266_v2 }
  0xf4   :  { %3169 = vmatprep.mubr.msk.f32.mxu0 %vm3267_vm0, %v3266_v2  ;;  %3177 = vmatprep.subr.mxu0 %v3266_v2 }
  0xf5   :  { %3193 = vmatpush3.msra.mxu1 %v3549_v54  ;;  %3194 = vmatprep.mubr.msk.f32.mxu1 %vm3267_vm0, %v3266_v2 }
  0xf6   :  { %3170 = vmatmul.mubr.f32.vlgmr.msra.gmra.mxu0 %v1991_v62  ;;  %3195 = vmatmul.mubr.msk.f32.vlgmr.msra.gmra.mxu1 %vm1917_vm5, %v3533_v50 }
  0xf7   :  { %3178 = vmatpush3.msra.mxu0 %v2476_v57  ;;  %3179 = vmatprep.mubr.msk.f32.mxu0 %vm3267_vm0, %v3266_v2 }
  0xf8   :  { %3187 = vmatprep.subr.mxu0 %v3266_v2 }
  0xfa   :  { %3180 = vmatmul.mubr.f32.vlgmr.msra.gmra.mxu0 %v1988_v56 }
  0xfb   :  { %3188 = vmatpush3.msra.mxu0 %v2477_v59  ;;  %3189 = vmatprep.mubr.msk.f32.mxu0 %vm3267_vm0, %v3266_v2 }
  0xfe   :  { %3190 = vmatmul.mubr.msk.f32.vlgmr.msra.gmra.mxu0 %vm1917_vm5, %v3533_v50 }
 0x15d   :  { %v231_v0 = vpop.f32.mrf.mxu1 }
 0x15f   :  { %v2982_v1 = vpop.f32.mrf.mxu1 }
 0x162   :  { %v382_v3 = vpop.f32.mrf.mxu1 }
 0x164   :  { %v2996_v4 = vpop.f32.mrf.mxu1 }
 0x166   :  { %v150_v5 = vpop.f32.mrf.mxu0  ;;  %v532_v6 = vpop.f32.mrf.mxu1 }
 0x167   :  { %v232_v7 = vadd.f32 %v231_v0, %v150_v5 }
 0x168   :  { %v2975_v8 = vpop.f32.mrf.mxu0  ;;  %v3010_v9 = vpop.f32.mrf.mxu1 }
 0x16c   :  { %v307_v10 = vpop.f32.mrf.mxu0  ;;  %v690_v11 = vpop.f32.mrf.mxu1 }
 0x16d   :  { %v308_v12 = vadd.f32 %v307_v10, %v232_v7 }
 0x16e   :  { %v2989_v13 = vpop.f32.mrf.mxu0  ;;  %v3024_v14 = vpop.f32.mrf.mxu1 }
 0x16f   :  { %v383_v15 = vadd.f32 %v382_v3, %v308_v12 }
 0x172   :  { %v459_v16 = vpop.f32.mrf.mxu0  ;;  %v841_v2 = vpop.f32.mrf.mxu1 }
 0x173   :  { %v460_v17 = vadd.f32 %v459_v16, %v383_v15 }
 0x174   :  { %v3003_v18 = vpop.f32.mrf.mxu0  ;;  %v3038_v19 = vpop.f32.mrf.mxu1 }
 0x175   :  { %v3631_v20 = vadd.f32 %v532_v6, %v460_v17 }
 0x178   :  { %v609_v21 = vpop.f32.mrf.mxu0  ;;  %v991_v22 = vpop.f32.mrf.mxu1 }
 0x179   :  { %v691_v23 = vadd.f32 %v690_v11, %v609_v21 }
 0x17a   :  { %v3017_v24 = vpop.f32.mrf.mxu0  ;;  %v3052_v25 = vpop.f32.mrf.mxu1 }
 0x17e   :  { %v766_v26 = vpop.f32.mrf.mxu0  ;;  %v1152_v27 = vpop.f32.mrf.mxu1 }
 0x17f   :  { %v767_v28 = vadd.f32 %v766_v26, %v691_v23 }
 0x180   :  { %v3031_v29 = vpop.f32.mrf.mxu0  ;;  %v3066_v30 = vpop.f32.mrf.mxu1 }
 0x181   :  { %v842_v31 = vadd.f32 %v841_v2, %v767_v28 }
 0x184   :  { %v918_v32 = vpop.f32.mrf.mxu0  ;;  %v1303_v33 = vpop.f32.mrf.mxu1 }
 0x185   :  { %v919_v34 = vadd.f32 %v918_v32, %v842_v31 }
 0x186   :  { %v3045_v35 = vpop.f32.mrf.mxu0  ;;  %v3080_v36 = vpop.f32.mrf.mxu1 }
 0x187   :  { %v3633_v37 = vadd.f32 %v991_v22, %v919_v34 }
 0x18a   :  { %v1071_v38 = vpop.f32.mrf.mxu0  ;;  %v3635_v39 = vpop.f32.mrf.mxu1 }
 0x18b   :  { %v1153_v15 = vadd.f32 %v1152_v27, %v1071_v38 }
 0x18c   :  { %v3059_v40 = vpop.f32.mrf.mxu0  ;;  %v3094_v41 = vpop.f32.mrf.mxu1 }
 0x190   :  { %v1228_v42 = vpop.f32.mrf.mxu0  ;;  %v1611_v43 = vpop.f32.mrf.mxu1 }
 0x191   :  { %v1229_v19 = vadd.f32 %v1228_v42, %v1153_v15 }
 0x192   :  { %v3073_v44 = vpop.f32.mrf.mxu0  ;;  %v3108_v45 = vpop.f32.mrf.mxu1 }
 0x193   :  { %v1304_v28 = vadd.f32 %v1303_v33, %v1229_v19 }
 0x196   :  { %v1380_v46 = vpop.f32.mrf.mxu0  ;;  %v1762_v47 = vpop.f32.mrf.mxu1 }
 0x197   :  { %v1381_v36 = vadd.f32 %v1380_v46, %v1304_v28 }
 0x198   :  { %v3087_v48 = vpop.f32.mrf.mxu0  ;;  %v3122_v49 = vpop.f32.mrf.mxu1 }
 0x199   :  { %v1454_v44 = vadd.f32 %v3635_v39, %v1381_v36 }
 0x19c   :  { %v1530_v50 = vpop.f32.mrf.mxu0  ;;  %v1912_v51 = vpop.f32.mrf.mxu1 }
 0x19d   :  { %v1612_v16 = vadd.f32 %v1611_v43, %v1530_v50 }
 0x19e   :  { %v3101_v52 = vpop.f32.mrf.mxu0  ;;  %v3136_v53 = vpop.f32.mrf.mxu1 }
 0x1a1   :  { %v1687_v54 = vpop.f32.mrf.mxu0  ;;  %v2069_v55 = vpop.f32.mrf.mxu1 }
 0x1a2   :  { %v1688_v21 = vadd.f32 %v1687_v54, %v1612_v16 }
 0x1a3   :  { %v3115_v56 = vpop.f32.mrf.mxu0  ;;  %v3146_v57 = vpop.f32.mrf.mxu1 }
 0x1a4   :  { %v1763_v29 = vadd.f32 %v1762_v47, %v1688_v21 }
 0x1a6   :  { %v1839_v58 = vpop.f32.mrf.mxu0  ;;  %v2217_v59 = vpop.f32.mrf.mxu1 }
 0x1a7   :  { %v1840_v27 = vadd.f32 %v1839_v58, %v1763_v29 }
 0x1a8   :  { %v3129_v60 = vpop.f32.mrf.mxu0  ;;  %v3156_v61 = vpop.f32.mrf.mxu1 }
 0x1a9   :  { %v1913_v33 = vadd.f32 %v1912_v51, %v1840_v27 }
 0x1aa   :  { %v1993_v62 = vpop.f32.mrf.mxu0  ;;  %v2363_v63 = vpop.f32.mrf.mxu1 }
 0x1ab   :  { %v2070_v7 = vadd.f32 %v2069_v55, %v1993_v62 }
 0x1ac   :  { %v3141_v0 = vpop.f32.mrf.mxu0  ;;  %v3166_v1 = vpop.f32.mrf.mxu1 }
 0x1ae   :  { %v2143_v3 = vpop.f32.mrf.mxu0  ;;  %v2516_v4 = vpop.f32.mrf.mxu1 }
 0x1af   :  { %v2144_v10 = vadd.f32 %v2143_v3, %v2070_v7 }
 0x1b0   :  { %v3151_v5 = vpop.f32.mrf.mxu0  ;;  %v3176_v6 = vpop.f32.mrf.mxu1 }
 0x1b1   :  { %v2218_v2 = vadd.f32 %v2217_v59, %v2144_v10 }
 0x1b2   :  { %v2291_v8 = vpop.f32.mrf.mxu0  ;;  %v2664_v9 = vpop.f32.mrf.mxu1 }
 0x1b3   :  { %v2292_v24 = vadd.f32 %v2291_v8, %v2218_v2 }
 0x1b4   :  { %v3161_v11 = vpop.f32.mrf.mxu0  ;;  %v3186_v12 = vpop.f32.mrf.mxu1 }
 0x1b5   :  { %v2364_v32 = vadd.f32 %v2363_v63, %v2292_v24 }
 0x1b6   :  { %v2440_v13 = vpop.f32.mrf.mxu0  ;;  %v2810_v14 = vpop.f32.mrf.mxu1 }
 0x1b7   :  { %v2517_v22 = vadd.f32 %v2516_v4, %v2440_v13  ;;  %v2814_v40 = vmul.f32 %v2364_v32, %v3631_v20  ;;  %v2819_v41 = vmul.f32 %v2364_v32, %v3633_v37 }
 0x1b8   :  { %v3171_v17 = vpop.f32.mrf.mxu0  ;;  %v3196_v18 = vpop.f32.mrf.mxu1 }
 0x1ba   :  { %v2590_v23 = vpop.f32.mrf.mxu0 }
 0x1bb   :  { %v2591_v25 = vadd.f32 %v2590_v23, %v2517_v22 }
 0x1bc   :  { %v3181_v26 = vpop.f32.mrf.mxu0 }
 0x1bd   :  { %v2665_v30 = vadd.f32 %v2664_v9, %v2591_v25 }
 0x1be   :  { %v2738_v31 = vpop.f32.mrf.mxu0 }
 0x1bf   :  { %v2739_v34 = vadd.f32 %v2738_v31, %v2665_v30 }
 0x1c0   :  { %v3191_v35 = vpop.f32.mrf.mxu0 }
 0x1c1   :  { %v2811_v38 = vadd.f32 %v2810_v14, %v2739_v34 }
 0x1c3   :  { %v2815_v42 = vmul.f32 %v2811_v38, %v3633_v37  ;;  %v2818_v43 = vmul.f32 %v2811_v38, %v3631_v20 }
 0x1c5   :  { %v2816_v45 = vsub.f32 %v2814_v40, %v2815_v42  ;;  %v2820_v47 = vadd.f32 %v2819_v41, %v2818_v43 }
 0x1c7   :  { %v2817_v48 = vsub.f32 %v2816_v45, %v1454_v44  ;;  %v2821_v49 = vsub.f32 %v2820_v47, %v1913_v33 }
 0x1c9   :  { %v2822_v50 = vmul.f32 %v2817_v48, %v2817_v48  ;;  %v2823_v52 = vmul.f32 %v2821_v49, %v2821_v49 }
 0x1cb   :  { %v2824_v46 = vadd.f32 %v2823_v52, %v2822_v50 }
 0x1cd   :  { %3210 = vrsqrt.f32 %v2824_v46  ;;  %vm2827_vm6 = vcmp.eq.f32.partialorder %v2824_v46, inf  ;;  %v2830_v55 = vand.u32 2147483648, %v2824_v46  ;;  %vm2829_vm8 = vcmp.eq.f32.partialorder %v2824_v46, 0.0 }
 0x1da   :  { %v3211_v53 = vpop.eup %3210 }
 0x1db   :  { %v2826_v54 = vmul.f32 %v3211_v53, %v2824_v46 }
 0x1dd   :  { %v2828_v56 = vsel %vm2827_vm6, %v2824_v46, %v2826_v54 }
 0x1de   :  { %v2831_v37 = vsel %vm2829_vm8, %v2830_v55, %v2828_v56 }
 0x1df   :  { %v2833_v20 = vsel %vm2832_vm7, %v2831_v37, 0.0 }
 0x1e0   :  { %2834 = vadd.xlane.f32.xlu1 %v2833_v20 }
 0x269   :  { %v2835_v39 = vpop.xlane.xlu1 %2834 }
 0x26a   :  { %v2836_v51 = vsub.f32 12.0, %v2835_v39 }
 0x26c   :  { %v2872_v57 = vmul.f32 -1.442695, %v2836_v51 }
 0x26e   :  { %3212 = vpow2.f32 %v2872_v57 }
 0x27b   :  { %v3213_v58 = vpop.eup %3212 }
 0x27c   :  { %v2840_v59 = vadd.f32 1.0, %v3213_v58 }
 0x27e   :  { %3214 = vrcp.f32 %v2840_v59 }
 0x28b   :  { %v3215_v60 = vpop.eup %3214 }
 0x28c   :  { %2844 = vst.msk [vmem:[%s3650_s5] sm:$0xff] %vm2843_vm9, %v3215_v60 }
 0x28d   :  { %2849 = vsyncpa [#allocation3], 1 }
 0x28e   :  { %2850 = vsyncpa [#allocation5], 1 }

</bundles_post_ra>
